<compile_context>
chip_gen: v7x
topology: tpu7x:2x2x1
jax: 0.10.0
libtpu: 0.0.40
codegen_flags: <defaults>
</compile_context>

<pallas_src>
import jax
import jax.numpy as jnp
from jax.experimental import pallas as pl
from jax.experimental.pallas import tpu as pltpu

_LANE = 128
_SUBLANE = 8
_MAX_LANES = 16384     # cap the trailing dim so large arrays keep many rows
_MAX_DMA_CHUNKS = 4    # 2-4 in-flight DMAs is enough to saturate HBM BW


def _factor_2d(total):
    """Exact (rows, cols) factorization of `total`.

    Prefer cols = largest multiple of 128 dividing total (<= _MAX_LANES);
    otherwise the largest divisor <= _MAX_LANES. Exact factorization means no
    padding and every row chunk is a contiguous HBM region.
    """
    cap = min(total, _MAX_LANES)
    best = 0
    c = _LANE
    while c <= cap:
        if total % c == 0:
            best = c
        c += _LANE
    if best == 0:
        for c in range(cap, 0, -1):
            if total % c == 0:
                best = c
                break
    return total // best, best


def _row_chunks(rows, max_chunks=_MAX_DMA_CHUNKS):
    """Split `rows` into <= max_chunks contiguous pieces (8-aligned boundaries
    where possible) so several DMAs can be in flight at once."""
    n = max(1, min(max_chunks, rows))
    chunks = []
    start = 0
    for j in range(n):
        if j < n - 1:
            end = (rows * (j + 1)) // n
            end = (end // _SUBLANE) * _SUBLANE
            end = max(end, start)
        else:
            end = rows
        if end > start:
            chunks.append((start, end - start))
        start = end
    return chunks


def _make_dma_copy_kernel(row_chunks):
    """Kernel: chunked HBM->HBM copy. Start every DMA, then wait on each."""

    def kernel(x_hbm, o_hbm, sems):
        copies = []
        for j, (start, size) in enumerate(row_chunks):
            cp = pltpu.make_async_copy(
                x_hbm.at[pl.ds(start, size), :],
                o_hbm.at[pl.ds(start, size), :],
                sems.at[j],
            )
            cp.start()
            copies.append(cp)
        for cp in copies:
            cp.wait()

    return kernel


def none_layer(x):
    """Identity forward of NoneLayer as a direct HBM->HBM DMA copy kernel."""
    # Degenerate sizes: nothing worth DMA-ing -> true identity, zero traffic.
    if x.ndim == 0 or x.size == 0:
        return x

    orig_shape = x.shape
    dtype = x.dtype
    total = int(x.size)
    itemsize = jnp.dtype(dtype).itemsize

    rows, cols = _factor_2d(total)
    x2 = x.reshape(rows, cols)
    chunks = _row_chunks(rows)

    out2 = pl.pallas_call(
        _make_dma_copy_kernel(chunks),
        out_shape=jax.ShapeDtypeStruct((rows, cols), dtype),
        in_specs=[pl.BlockSpec(memory_space=pl.ANY)],   # stay in HBM, no auto-DMA
        out_specs=pl.BlockSpec(memory_space=pl.ANY),    # stay in HBM, no auto-DMA
        scratch_shapes=[pltpu.SemaphoreType.DMA((len(chunks),))],
        cost_estimate=pl.CostEstimate(
            flops=0,
            transcendentals=0,
            bytes_accessed=2 * total * itemsize,
        ),
    )(x2)

    return out2.reshape(orig_shape)


if __name__ == "__main__":
    key = jax.random.PRNGKey(0)
    # Small NCHW input consistent with a conv-style module: batch=2, ch=4, 16x16.
    x = jax.random.normal(key, (2, 4, 16, 16), dtype=jnp.float32)
    expected = jnp.copy(x)

    y = none_layer(x)
    jax.block_until_ready(y)

    assert y.shape == expected.shape
    assert y.dtype == expected.dtype
    assert bool(jnp.all(y == expected))
    print("KERNEL_OK")
</pallas_src>

<mosaic_0001>
module attributes {stable_mosaic.version = 11 : i64} {
  func.func @kernel(%arg0: memref<1x2048xf32, #tpu.memory_space<any>>, %arg1: memref<1x2048xf32, #tpu.memory_space<any>>, %arg2: memref<1x!tpu.dma_semaphore, #tpu.memory_space<semaphore_mem>>) attributes {dimension_semantics = [], scalar_prefetch = 0 : i64, scratch_operands = 1 : i64, tpu.core_type = #tpu.core_type<tc>} {
    %c0_i32 = arith.constant 0 : i32
    %c0_i32_0 = arith.constant 0 : i32
    %c0_i32_1 = arith.constant 0 : i32
    %0 = tpu.memref_slice %arg0[%c0_i32_0, %c0_i32_1] : memref<1x2048xf32, #tpu.memory_space<any>> -> memref<1x2048xf32, #tpu.memory_space<any>>
    %c0_i32_2 = arith.constant 0 : i32
    %c0_i32_3 = arith.constant 0 : i32
    %1 = tpu.memref_slice %arg1[%c0_i32_2, %c0_i32_3] : memref<1x2048xf32, #tpu.memory_space<any>> -> memref<1x2048xf32, #tpu.memory_space<any>>
    %2 = tpu.memref_slice %arg2[%c0_i32] : memref<1x!tpu.dma_semaphore, #tpu.memory_space<semaphore_mem>> -> memref<1x!tpu.dma_semaphore, #tpu.memory_space<semaphore_mem>>
    %3 = tpu.memref_squeeze %2 : memref<1x!tpu.dma_semaphore, #tpu.memory_space<semaphore_mem>> -> memref<!tpu.dma_semaphore, #tpu.memory_space<semaphore_mem>>
    tpu.enqueue_dma source(%0 : memref<1x2048xf32, #tpu.memory_space<any>>) target(%1 : memref<1x2048xf32, #tpu.memory_space<any>>) target_semaphore(%3 : memref<!tpu.dma_semaphore, #tpu.memory_space<semaphore_mem>>)
    %c0_i32_4 = arith.constant 0 : i32
    %c0_i32_5 = arith.constant 0 : i32
    %c0_i32_6 = arith.constant 0 : i32
    %4 = tpu.memref_slice %arg0[%c0_i32_5, %c0_i32_6] : memref<1x2048xf32, #tpu.memory_space<any>> -> memref<1x2048xf32, #tpu.memory_space<any>>
    %c0_i32_7 = arith.constant 0 : i32
    %c0_i32_8 = arith.constant 0 : i32
    %5 = tpu.memref_slice %arg1[%c0_i32_7, %c0_i32_8] : memref<1x2048xf32, #tpu.memory_space<any>> -> memref<1x2048xf32, #tpu.memory_space<any>>
    %6 = tpu.memref_slice %arg2[%c0_i32_4] : memref<1x!tpu.dma_semaphore, #tpu.memory_space<semaphore_mem>> -> memref<1x!tpu.dma_semaphore, #tpu.memory_space<semaphore_mem>>
    %7 = tpu.memref_squeeze %6 : memref<1x!tpu.dma_semaphore, #tpu.memory_space<semaphore_mem>> -> memref<!tpu.dma_semaphore, #tpu.memory_space<semaphore_mem>>
    tpu.wait_dma2 semaphore(%7 : memref<!tpu.dma_semaphore, #tpu.memory_space<semaphore_mem>>) src(%4 : memref<1x2048xf32, #tpu.memory_space<any>>) dst(%5 : memref<1x2048xf32, #tpu.memory_space<any>>)
    return
  }
}

</mosaic_0001>

<bundles_post_ra>
// kernel: tpu_custom_call.1
= control target key start
LH: loop header
LB: loop body
LE: loop exit
PB: predicated region body
PF: predicated region fallthrough
CT: control target
= control target key end

     0   :  { %s34_s6 = smov [#allocation2]   ;;  %s35_s7 = smov [#allocation3]   ;;  %s53_s0 = inlined_call_operand.hbm [shape: f32[1,2048], index: 0, kind: input, shape index: {}]   ;;  %s54_s1 = inlined_call_operand.hbm [shape: f32[1,2048], index: 1, kind: output, shape index: {}]  }
   0x1   :  { %s36_s8 = smov 0  }
   0x2   :  { %18 = dma.general %s53_s0, 256, %s54_s1, %s34_s6, %s35_s7, [#allocation4], %s36_s8, 0  }
   0x3   :  { %32 = dma.done.wait [#allocation2], 256 }
   0x4   :  { %33 = vsyncadd [#allocation2], 4294967040 }
   0x5   :  { %22 = vsyncmov [#allocation2] }
   0x8   :  { %s23_s13 = vpop.sfrf %22 }
   0x9   :  { %p28_p0 = scmp.ne.s32.totalorder %s23_s13, 0 }
   0xb   :  { %27 = shalt.err (%p28_p0)  }

</bundles_post_ra>
